<compile_context>
chip_gen: v6e
topology: v6e:2x2x1
jax: 0.10.0
libtpu: 0.0.40
codegen_flags: <defaults>
</compile_context>

<pallas_src>
import jax
import jax.numpy as jnp
from jax.experimental import pallas as pl
from jax.experimental.pallas import tpu as pltpu


# ----------------------------------------------------------------------------
# glue: PyTorch-compatible bilinear interpolation (align_corners=False)
# ----------------------------------------------------------------------------
def _interp_src(in_size, out_size):
    scale = in_size / out_size
    src = (jnp.arange(out_size, dtype=jnp.float32) + 0.5) * scale - 0.5
    src = jnp.maximum(src, 0.0)
    i0 = jnp.minimum(jnp.floor(src).astype(jnp.int32), in_size - 1)
    i1 = jnp.minimum(i0 + 1, in_size - 1)
    lam = src - i0.astype(jnp.float32)
    return i0, i1, lam


def bilinear_resize_2d(img, out_h, out_w):
    """Matches torch.nn.functional.interpolate(mode='bilinear', align_corners=False)."""
    in_h, in_w = img.shape
    r0, r1, rl = _interp_src(in_h, out_h)
    c0, c1, cl = _interp_src(in_w, out_w)
    top = img[r0][:, c0] * (1.0 - cl)[None, :] + img[r0][:, c1] * cl[None, :]
    bot = img[r1][:, c0] * (1.0 - cl)[None, :] + img[r1][:, c1] * cl[None, :]
    return top * (1.0 - rl)[:, None] + bot * rl[:, None]


# ----------------------------------------------------------------------------
# glue: real matrices implementing rfft / irfft (norm='ortho') along length a
# ----------------------------------------------------------------------------
def build_dft_matrices(a):
    nf = a // 2 + 1
    n = jnp.arange(a, dtype=jnp.float32)
    f = jnp.arange(nf, dtype=jnp.float32)
    ang = 2.0 * jnp.pi * f[:, None] * n[None, :] / float(a)      # (nf, a)
    s = 1.0 / jnp.sqrt(jnp.float32(a))
    fwd_r = jnp.cos(ang) * s           # X_r = fwd_r @ x
    fwd_i = -jnp.sin(ang) * s          # X_i = fwd_i @ x
    # irfft('ortho'): x[n] = s * sum_f c_f * (Y_r[f]*cos(ang) - Y_i[f]*sin(ang))
    # (sin rows are exactly 0 at DC / Nyquist, so their imag parts drop out,
    #  matching torch/jnp irfft semantics.)
    c = jnp.full((nf,), 2.0, dtype=jnp.float32).at[0].set(1.0)
    if a % 2 == 0:
        c = c.at[nf - 1].set(1.0)
    inv_r = (jnp.cos(ang) * c[:, None] * s).T                    # (a, nf)
    inv_i = (-jnp.sin(ang) * c[:, None] * s).T                   # (a, nf)
    return fwd_r, fwd_i, inv_r, inv_i


def _round_up(x, m):
    return (x + m - 1) // m * m


def _pick_lane_tile(n_pad, target=512):
    """Lane tile: multiple of 128 dividing n_pad; prefer >=2 grid steps (v7x 2 TCs)."""
    tn = min(target, n_pad)
    if n_pad >= 256:
        tn = min(tn, n_pad // 2)
    tn = max(128, (tn // 128) * 128)
    while n_pad % tn:
        tn -= 128
    return tn


# ----------------------------------------------------------------------------
# Pallas kernel:  fused rfft -> complex filter -> fused irfft -> SSF -> residual
# ----------------------------------------------------------------------------
def freqfit_forward(x, complex_weight, ssf_scale, ssf_shift, *, lane_tile=512):
    B, a, C = x.shape
    x = x.astype(jnp.float32)

    nf = a // 2 + 1
    nf_p = _round_up(nf, 8)          # padded frequency rows (sublane multiple)
    a_p = _round_up(a, 8)            # padded token rows
    N = B * C
    N_p = _round_up(N, 128)          # lane-dense flattened batch*channel axis
    TN = _pick_lane_tile(N_p, lane_tile)

    # ---- parameter glue (plain JAX, tiny) ---------------------------------
    # spectral filter, bilinearly resized to (nf, C)
    w = jnp.squeeze(complex_weight[0])                                # (h, dim, 2)
    w_r = bilinear_resize_2d(w[..., 0].astype(jnp.float32), nf, C)    # (nf, C)
    w_i = bilinear_resize_2d(w[..., 1].astype(jnp.float32), nf, C)

    def filt_layout(m):              # (nf, C) -> (nf_p, N_p), batch-tiled lanes
        m = jnp.pad(m, ((0, nf_p - nf), (0, 0)))
        m = jnp.tile(m, (1, B))
        return jnp.pad(m, ((0, 0), (0, N_p - N)))

    wr = filt_layout(w_r)
    wi = filt_layout(w_i)

    def vec_layout(v):               # (C,) -> (1, N_p), batch-tiled lanes
        m = jnp.tile(v.astype(jnp.float32).reshape(1, C), (1, B))
        return jnp.pad(m, ((0, 0), (0, N_p - N)))

    sc = vec_layout(ssf_scale[0])
    sh = vec_layout(ssf_shift[0])

    # DFT matrices, fused + zero-padded, bf16 for the MXU (f32 accumulation)
    fr, fi, gr, gi = build_dft_matrices(a)
    F = jnp.zeros((2 * nf_p, a_p), jnp.float32)
    F = F.at[:nf, :a].set(fr).at[nf_p:nf_p + nf, :a].set(fi)          # [Fr; Fi]
    G = jnp.zeros((a_p, 2 * nf_p), jnp.float32)
    G = G.at[:a, :nf].set(gr).at[:a, nf_p:nf_p + nf].set(gi)          # [Gr | Gi]
    F = F.astype(jnp.bfloat16)
    G = G.astype(jnp.bfloat16)

    # x: (B, a, C) -> (a, B*C), zero-padded to (a_p, N_p) so all blocks are
    # (8,128)-friendly and output stores are unmasked full-lane vst.
    xt = jnp.transpose(x, (1, 0, 2)).reshape(a, N)
    xt = jnp.pad(xt, ((0, a_p - a), (0, N_p - N)))

    # ---- kernel ------------------------------------------------------------
    def kernel(x_ref, f_ref, g_ref, wr_ref, wi_ref, sc_ref, sh_ref, o_ref):
        xv = x_ref[...]                                               # (a_p, TN) f32
        scale = sc_ref[...]                                           # (1, TN)
        shift = sh_ref[...]

        # fused rfft: one bf16 matmul, f32 accumulate -> [Xr; Xi]
        xf = jnp.dot(f_ref[...], xv.astype(jnp.bfloat16),
                     preferred_element_type=jnp.float32)              # (2*nf_p, TN)
        xr = xf[:nf_p]
        xi = xf[nf_p:]

        # complex filter multiply (VPU, f32)
        wrv = wr_ref[...]
        wiv = wi_ref[...]
        yr = xr * wrv - xi * wiv
        yi = xr * wiv + xi * wrv
        y = jnp.concatenate([yr, yi], axis=0).astype(jnp.bfloat16)    # [Yr; Yi]

        # fused irfft: one bf16 matmul, f32 accumulate
        out = jnp.dot(g_ref[...], y, preferred_element_type=jnp.float32)  # (a_p, TN)

        # SSF scale/shift + residual
        o_ref[...] = out * scale + shift + xv

    # Per-step working set (double-buffered x / filter / output tiles plus the
    # grid-invariant DFT matrices) is a few MiB at realistic shapes -- well
    # under v7x's 64 MiB physical VMEM; cap explicitly anyway.
    out_pad = pl.pallas_call(
        kernel,
        out_shape=jax.ShapeDtypeStruct((a_p, N_p), jnp.float32),
        grid=(N_p // TN,),
        in_specs=[
            pl.BlockSpec((a_p, TN), lambda j: (0, j)),            # x slab
            pl.BlockSpec((2 * nf_p, a_p), lambda j: (0, 0)),      # [Fr;Fi] (invariant)
            pl.BlockSpec((a_p, 2 * nf_p), lambda j: (0, 0)),      # [Gr|Gi] (invariant)
            pl.BlockSpec((nf_p, TN), lambda j: (0, j)),           # filter real
            pl.BlockSpec((nf_p, TN), lambda j: (0, j)),           # filter imag
            pl.BlockSpec((1, TN), lambda j: (0, j)),              # ssf scale
            pl.BlockSpec((1, TN), lambda j: (0, j)),              # ssf shift
        ],
        out_specs=pl.BlockSpec((a_p, TN), lambda j: (0, j)),
        compiler_params=pltpu.CompilerParams(
            dimension_semantics=("parallel",),
            vmem_limit_bytes=64 * 1024 * 1024),
    )(xt, F, G, wr, wi, sc, sh)

    # undo padding / flattening: (a_p, N_p) -> (B, a, C)
    out = out_pad[:a, :N].reshape(a, B, C)
    return jnp.transpose(out, (1, 0, 2))


# ----------------------------------------------------------------------------
# pure-JAX reference (uses jnp.fft) for a correctness spot-check
# ----------------------------------------------------------------------------
def freqfit_reference(x, complex_weight, ssf_scale, ssf_shift):
    B, a, C = x.shape
    x = x.astype(jnp.float32)
    res = x
    nf = a // 2 + 1
    xf = jnp.fft.rfft(x, axis=1, norm="ortho")
    w = jnp.squeeze(complex_weight[0])
    w_r = bilinear_resize_2d(w[..., 0], nf, C)
    w_i = bilinear_resize_2d(w[..., 1], nf, C)
    xf = xf * (w_r + 1j * w_i)[None]
    y = jnp.fft.irfft(xf, n=a, axis=1, norm="ortho")
    return y * ssf_scale[0] + ssf_shift[0] + res


if __name__ == "__main__":
    # small shapes consistent with the module: tokens=8, dim=32, h=14, block=8
    B, seq, dim, h, block = 2, 8, 32, 14, 8

    key = jax.random.PRNGKey(0)
    k_x, k_cw, k_sc, k_sh = jax.random.split(key, 4)

    x = jax.random.normal(k_x, (B, seq, dim), dtype=jnp.float32)
    # deterministic synthetic parameters (shapes from FreqFit.__init__)
    complex_weight = 0.02 * jax.random.normal(k_cw, (block, h, dim, 2), dtype=jnp.float32)
    ssf_scale = 1.0 + 0.02 * jax.random.normal(k_sc, (block, dim), dtype=jnp.float32)
    ssf_shift = 0.02 * jax.random.normal(k_sh, (block, dim), dtype=jnp.float32)
    # NOTE: FreqFit.__init__ also defines self.scale/self.shift (dim,), but the
    # forward pass never uses them, so they are intentionally omitted here.

    out = freqfit_forward(x, complex_weight, ssf_scale, ssf_shift)
    out = jax.block_until_ready(out)

    ref = freqfit_reference(x, complex_weight, ssf_scale, ssf_shift)
    max_err = float(jnp.max(jnp.abs(out - ref)))
    assert out.shape == (B, seq, dim), out.shape
    # tolerance intentionally loose: DFT matrices / matmul inputs are bf16
    # (f32 accumulation), expected max-abs error ~1e-3.
    assert max_err < 5e-2, f"max abs error vs jnp.fft reference: {max_err}"

    print("KERNEL_OK")
</pallas_src>

<mosaic_0001>
module attributes {stable_mosaic.version = 11 : i64} {
  func.func @kernel(%arg0: i32, %arg1: memref<8x128xf32, #tpu.memory_space<vmem>>, %arg2: memref<16x8xbf16, #tpu.memory_space<vmem>>, %arg3: memref<8x16xbf16, #tpu.memory_space<vmem>>, %arg4: memref<8x128xf32, #tpu.memory_space<vmem>>, %arg5: memref<8x128xf32, #tpu.memory_space<vmem>>, %arg6: memref<1x128xf32, #tpu.memory_space<vmem>>, %arg7: memref<1x128xf32, #tpu.memory_space<vmem>>, %arg8: memref<8x128xf32, #tpu.memory_space<vmem>>) attributes {dimension_semantics = [#tpu.dimension_semantics<parallel>], iteration_bounds = array<i64: 1>, scalar_prefetch = 0 : i64, scratch_operands = 0 : i64, tpu.core_type = #tpu.core_type<tc>, window_params = [{transform_indices = @transform_0, window_bounds = array<i64: 8, 128>}, {pipeline_mode = #tpu.pipeline_mode<synchronous>, transform_indices = @transform_1, window_bounds = array<i64: 16, 8>}, {pipeline_mode = #tpu.pipeline_mode<synchronous>, transform_indices = @transform_2, window_bounds = array<i64: 8, 16>}, {transform_indices = @transform_3, window_bounds = array<i64: 8, 128>}, {transform_indices = @transform_4, window_bounds = array<i64: 8, 128>}, {transform_indices = @transform_5, window_bounds = array<i64: 1, 128>}, {transform_indices = @transform_6, window_bounds = array<i64: 1, 128>}, {transform_indices = @transform_7, window_bounds = array<i64: 8, 128>}]} {
    %c0 = arith.constant 0 : index
    %c0_0 = arith.constant 0 : index
    %0 = vector.load %arg1[%c0, %c0_0] : memref<8x128xf32, #tpu.memory_space<vmem>>, vector<8x128xf32>
    %c0_1 = arith.constant 0 : index
    %c0_2 = arith.constant 0 : index
    %1 = vector.load %arg6[%c0_1, %c0_2] : memref<1x128xf32, #tpu.memory_space<vmem>>, vector<1x128xf32>
    %c0_3 = arith.constant 0 : index
    %c0_4 = arith.constant 0 : index
    %2 = vector.load %arg7[%c0_3, %c0_4] : memref<1x128xf32, #tpu.memory_space<vmem>>, vector<1x128xf32>
    %c0_5 = arith.constant 0 : index
    %c0_6 = arith.constant 0 : index
    %3 = vector.load %arg2[%c0_5, %c0_6] : memref<16x8xbf16, #tpu.memory_space<vmem>>, vector<16x8xbf16>
    %4 = arith.truncf %0 : vector<8x128xf32> to vector<8x128xbf16>
    %cst = arith.constant dense<0.000000e+00> : vector<16x128xf32>
    %5 = tpu.matmul %3, %4, %cst {dimension_numbers = #tpu.dot_dimension_numbers<[1], [0], [0], [1], [0, 0, 1, 1], [], []>} : vector<16x8xbf16>, vector<8x128xbf16>, vector<16x128xf32> -> vector<16x128xf32>
    %6 = vector.extract_strided_slice %5 {offsets = [0, 0], sizes = [8, 128], strides = [1, 1]} : vector<16x128xf32> to vector<8x128xf32>
    %7 = vector.extract_strided_slice %5 {offsets = [8, 0], sizes = [8, 128], strides = [1, 1]} : vector<16x128xf32> to vector<8x128xf32>
    %c0_7 = arith.constant 0 : index
    %c0_8 = arith.constant 0 : index
    %8 = vector.load %arg4[%c0_7, %c0_8] : memref<8x128xf32, #tpu.memory_space<vmem>>, vector<8x128xf32>
    %c0_9 = arith.constant 0 : index
    %c0_10 = arith.constant 0 : index
    %9 = vector.load %arg5[%c0_9, %c0_10] : memref<8x128xf32, #tpu.memory_space<vmem>>, vector<8x128xf32>
    %10 = arith.mulf %6, %8 : vector<8x128xf32>
    %11 = arith.mulf %7, %9 : vector<8x128xf32>
    %12 = arith.subf %10, %11 : vector<8x128xf32>
    %13 = arith.mulf %6, %9 : vector<8x128xf32>
    %14 = arith.mulf %7, %8 : vector<8x128xf32>
    %15 = arith.addf %13, %14 : vector<8x128xf32>
    %16 = tpu.concatenate %12, %15 in 0 : vector<8x128xf32>, vector<8x128xf32> -> vector<16x128xf32>
    %17 = arith.truncf %16 : vector<16x128xf32> to vector<16x128xbf16>
    %c0_11 = arith.constant 0 : index
    %c0_12 = arith.constant 0 : index
    %18 = vector.load %arg3[%c0_11, %c0_12] : memref<8x16xbf16, #tpu.memory_space<vmem>>, vector<8x16xbf16>
    %cst_13 = arith.constant dense<0.000000e+00> : vector<8x128xf32>
    %19 = tpu.matmul %18, %17, %cst_13 {dimension_numbers = #tpu.dot_dimension_numbers<[1], [0], [0], [1], [0, 0, 1, 1], [], []>} : vector<8x16xbf16>, vector<16x128xbf16>, vector<8x128xf32> -> vector<8x128xf32>
    %20 = vector.broadcast %1 : vector<1x128xf32> to vector<8x128xf32>
    %21 = arith.mulf %19, %20 : vector<8x128xf32>
    %22 = vector.broadcast %2 : vector<1x128xf32> to vector<8x128xf32>
    %23 = arith.addf %21, %22 : vector<8x128xf32>
    %24 = arith.addf %23, %0 : vector<8x128xf32>
    %c0_14 = arith.constant 0 : index
    %c0_15 = arith.constant 0 : index
    %25 = vector.load %arg8[%c0_14, %c0_15] : memref<8x128xf32, #tpu.memory_space<vmem>>, vector<8x128xf32>
    tpu.vector_store %arg8[%c0_14, %c0_15], %24 {strides = array<i32>} : memref<8x128xf32, #tpu.memory_space<vmem>>, vector<8x128xf32>,
    return
  }
  func.func @transform_0(%arg0: i32) -> (i32, i32) {
    %c0_i32 = arith.constant 0 : i32
    %c0_i32_0 = arith.constant 0 : i32
    return %c0_i32, %arg0 : i32, i32
  }
  func.func @transform_1(%arg0: i32) -> (i32, i32) {
    %c0_i32 = arith.constant 0 : i32
    %c0_i32_0 = arith.constant 0 : i32
    %c0_i32_1 = arith.constant 0 : i32
    return %c0_i32, %c0_i32_0 : i32, i32
  }
  func.func @transform_2(%arg0: i32) -> (i32, i32) {
    %c0_i32 = arith.constant 0 : i32
    %c0_i32_0 = arith.constant 0 : i32
    %c0_i32_1 = arith.constant 0 : i32
    return %c0_i32, %c0_i32_0 : i32, i32
  }
  func.func @transform_3(%arg0: i32) -> (i32, i32) {
    %c0_i32 = arith.constant 0 : i32
    %c0_i32_0 = arith.constant 0 : i32
    return %c0_i32, %arg0 : i32, i32
  }
  func.func @transform_4(%arg0: i32) -> (i32, i32) {
    %c0_i32 = arith.constant 0 : i32
    %c0_i32_0 = arith.constant 0 : i32
    return %c0_i32, %arg0 : i32, i32
  }
  func.func @transform_5(%arg0: i32) -> (i32, i32) {
    %c0_i32 = arith.constant 0 : i32
    %c0_i32_0 = arith.constant 0 : i32
    return %c0_i32, %arg0 : i32, i32
  }
  func.func @transform_6(%arg0: i32) -> (i32, i32) {
    %c0_i32 = arith.constant 0 : i32
    %c0_i32_0 = arith.constant 0 : i32
    return %c0_i32, %arg0 : i32, i32
  }
  func.func @transform_7(%arg0: i32) -> (i32, i32) {
    %c0_i32 = arith.constant 0 : i32
    %c0_i32_0 = arith.constant 0 : i32
    return %c0_i32, %arg0 : i32, i32
  }
}

</mosaic_0001>

<bundles_post_ra>
// kernel: tpu_custom_call.1
= control target key start
LH: loop header
LB: loop body
LE: loop exit
PB: predicated region body
PF: predicated region fallthrough
CT: control target
= control target key end

     0   :  { %12 = vsyncpa [#allocation3], 0  ;;  %s360_s0 = inlined_call_operand.vmem [shape: f32[8,128], index: 0, kind: input, shape index: {}]   ;;  %s361_s1 = inlined_call_operand.vmem [shape: bf16[16,8], index: 1, kind: input, shape index: {}]   ;;  %s362_s2 = inlined_call_operand.hbm [shape: bf16[8,16], index: 2, kind: input, shape index: {}]   ;;  %s363_s3 = inlined_call_operand.vmem [shape: f32[8,128], index: 3, kind: input, shape index: {}]   ;;  %s364_s4 = inlined_call_operand.hbm [shape: f32[8,128], index: 4, kind: input, shape index: {}]   ;;  %s365_s5 = inlined_call_operand.vmem [shape: f32[1,128], index: 5, kind: input, shape index: {}]   ;;  %s366_s6 = inlined_call_operand.vmem [shape: f32[1,128], index: 6, kind: input, shape index: {}]   ;;  %s367_s7 = inlined_call_operand.hbm [shape: f32[8,128], index: 7, kind: output, shape index: {}]  }
   0x1   :  { %13 = vsyncpa [#allocation6], 0 }
   0x2   :  { %14 = vsyncpa [#allocation4], 0  ;;  %s291_s24 = smov [#allocation2]   ;;  %s292_s26 = smov [#allocation5]  }
   0x3   :  { %s25_s25 = sshll.u32 %s291_s24, 4  ;;  %s37_s27 = sshll.u32 %s292_s26, 4  ;;  %s26_s25 = int_to_ptr.vmem [resolvable:$true] %s25_s25  ;;  %s38_s27 = int_to_ptr.vmem [resolvable:$true] %s37_s27 }
   0x4   :  { %s233_s28 = scalar_lea.vmem %s26_s25, 64  ;;  %p238_p1 = scmp.lt.s32.totalorder %s26_s25, %s26_s25 }
   0x5   :  { %p234_p0 = scmp.ne.s32.totalorder %s26_s25, %s233_s28  ;;  %p239_p2 = scmp.lt.s32.totalorder %s233_s28, %s233_s28 }
   0x7   :  { %p240_p3 = por %p239_p2, %p238_p1 }
   0x9   :  { %p241_p4 = pnand %p240_p3, %p234_p0 }
   0xb   :  { %244 = shalt.err (!%p241_p4)
}
   0xc   :  { %28 = dma.hbm_to_vmem [thread:$0]  %s362_s2, 64, %s26_s25, [#allocation3]  }
   0xd   :  { %s253_s8 = scalar_lea.vmem %s38_s27, 128  ;;  %p258_p6 = scmp.lt.s32.totalorder %s38_s27, %s38_s27 }
   0xe   :  { %p254_p5 = scmp.ne.s32.totalorder %s38_s27, %s253_s8  ;;  %p259_p7 = scmp.lt.s32.totalorder %s253_s8, %s253_s8 }
  0x10   :  { %p260_p8 = por %p259_p7, %p258_p6 }
  0x12   :  { %p261_p9 = pnand %p260_p8, %p254_p5 }
  0x14   :  { %264 = shalt.err (!%p261_p9)
}
  0x15   :  { %40 = dma.hbm_to_vmem [thread:$0]  %s364_s4, 128, %s38_s27, [#allocation6]  }
  0x16   :  { %285 = dma.done.wait [#allocation3], 64  }
  0x17   :  { %286 = vsyncadd [#allocation3], 4294967232 }
  0x18   :  { %287 = dma.done.wait [#allocation6], 128  }
  0x19   :  { %288 = vsyncadd [#allocation6], 4294967168  ;;  %v293_v0 = vmov 0.0   ;;  %vm294_vm0 = vmmov 0   ;;  %v52_v1 = vld [vmem:[%s360_s0] sm:$0xff]  ;;  %vm67_vm1 = vcmask 1043456  }
  0x1a   :  { %207 = vmatprep.subr.bf16.mxu0 %v293_v0  ;;  %209 = vmatprep.mubr.msk.bf16.mxu0 %vm294_vm0, %v293_v0  ;;  %v57_v2 = vpack.c.bf16 %v52_v1, %v52_v1  ;;  %v224_v4 = vld [vmem:[%s361_s1] sm:$0xff]   ;;  %vm63_vm2 = vcmask 64512   ;;  %vm122_vm3 = vcmask 130048   ;;  %s295_s16 = smov [#allocation7]  }
  0x1b   :  { %213 = vmatprep.subr.bf16.mxu1 %v293_v0  ;;  %215 = vmatprep.mubr.msk.bf16.mxu1 %vm294_vm0, %v293_v0  ;;  %v112_v6 = vld [vmem:[%s363_s3] sm:$0xff]  ;;  %s188_s17 = sshll.u32 %s295_s16, 4  ;;  %s189_s17 = int_to_ptr.vmem [resolvable:$true] %s188_s17 }
  0x1c   :  { %v69_v3 = vsel %vm67_vm1, %v57_v2, 0  ;;  %v113_v7 = vld [vmem:[#allocation5] sm:$0xff]  ;;  %v121_v18 = vld [vmem:[#allocation2] sm:$0xf]  ;;  %s265_s18 = scalar_lea.vmem %s189_s17, 128  ;;  %p270_p11 = scmp.lt.s32.totalorder %s189_s17, %s189_s17 }
  0x1d   :  { %208 = vmatpush3.bf16.msra.mxu0 %v69_v3  ;;  %v201_v19 = vld [vmem:[%s365_s5] ss:$0 sm:$0xff]  ;;  %p266_p10 = scmp.ne.s32.totalorder %s189_s17, %s265_s18  ;;  %p271_p12 = scmp.lt.s32.totalorder %s265_s18, %s265_s18 }
  0x1e   :  { %v202_v20 = vld [vmem:[%s366_s6] ss:$0 sm:$0xff] }
  0x1f   :  { %p272_p13 = por %p271_p12, %p270_p11 }
  0x20   :  { %210 = vmatmul.mubr.msk.bf16.vlgmr.msra.gmra.mxu0 %vm63_vm2, %v224_v4 }
  0x21   :  { %p273_p0 = pnand %p272_p13, %p266_p10 }
  0xe0   :  { %v105_v5 = vpop.f32.mrf.mxu0 }
  0xe1   :  { %v114_v10 = vmul.f32 %v112_v6, %v105_v5  ;;  %v117_v11 = vmul.f32 %v113_v7, %v105_v5 }
  0xe2   :  { %v211_v8 = vpop.f32.mrf.mxu0 }
  0xe4   :  { %v108_v9 = vpop.f32.mrf.mxu0 }
  0xe5   :  { %v115_v12 = vmul.f32 %v113_v7, %v108_v9  ;;  %v118_v13 = vmul.f32 %v112_v6, %v108_v9 }
  0xe6   :  { %v212_v14 = vpop.f32.mrf.mxu0 }
  0xe7   :  { %v116_v15 = vsub.f32 %v114_v10, %v115_v12  ;;  %v119_v16 = vadd.f32 %v118_v13, %v117_v11 }
  0xe9   :  { %v120_v17 = vpack.c.bf16 %v119_v16, %v116_v15 }
  0xeb   :  { %214 = vmatpush3.bf16.msra.mxu1 %v120_v17 }
  0xee   :  { %216 = vmatmul.mubr.msk.bf16.vlgmr.msra.gmra.mxu1 %vm122_vm3, %v121_v18 }
 0x1ae   :  { %v160_v21 = vpop.f32.mrf.mxu1 }
 0x1af   :  { %v172_v22 = vmul.f32 %v201_v19, %v160_v21 }
 0x1b0   :  { %v217_v23 = vpop.f32.mrf.mxu1 }
 0x1b1   :  { %v179_v24 = vadd.f32 %v202_v20, %v172_v22 }
 0x1b2   :  { %v163_v25 = vpop.f32.mrf.mxu1 }
 0x1b3   :  { %v180_v26 = vadd.f32 %v179_v24, %v52_v1 }
 0x1b4   :  { %v218_v27 = vpop.f32.mrf.mxu1 }
 0x1b5   :  { %181 = vst [vmem:[#allocation7] sm:$0xff] %v180_v26 }
 0x1b6   :  { %276 = shalt.err (!%p273_p0)
}
 0x1b7   :  { %191 = dma.vmem_to_hbm [thread:$0]  %s189_s17, 128, %s367_s7, [#allocation4]  }
 0x1b8   :  { %289 = dma.done.wait [#allocation4], 128  }
 0x1b9   :  { %290 = vsyncadd [#allocation4], 4294967168 }
 0x1ba   :  { %195 = vsyncpa [#allocation3], 1 }
 0x1bb   :  { %196 = vsyncpa [#allocation6], 1 }
 0x1bc   :  { %197 = vsyncpa [#allocation4], 1 }

</bundles_post_ra>
